<compile_context>
chip_gen: v7x
topology: tpu7x:2x2x1
jax: 0.10.0
libtpu: 0.0.40
codegen_flags: <defaults>
</compile_context>

<pallas_src>
import jax
import jax.numpy as jnp
from jax.experimental import pallas as pl
from jax.experimental.pallas import tpu as pltpu


def _round_up(x, m):
    return (x + m - 1) // m * m


def clip_finetune_kernel(x_ref, wenc_ref, benc_ref, wcls_ref, bcls_ref,
                         out_ref, acc_ref):
    """Grid = (M tiles, K tiles).  K (reduction) is the last grid axis."""
    k = pl.program_id(1)

    @pl.when(k == 0)
    def _init():
        acc_ref[...] = jnp.zeros_like(acc_ref)

    # ---- frozen encoder partial matmul (no_grad / half precision path) ----
    # Cast the f32 activation tile to bf16 in-kernel; bf16 x bf16 on the MXU
    # with f32 accumulation into the resident VMEM accumulator.
    x_bf16 = x_ref[...].astype(jnp.bfloat16)
    acc_ref[...] += jnp.dot(x_bf16, wenc_ref[...],
                            preferred_element_type=jnp.float32)

    @pl.when(k == pl.num_programs(1) - 1)
    def _finalize():
        # Accumulator is already f32 (== features.float()); add encoder bias
        # once, then the trainable f32 classifier Linear (tiny matmul).
        feats = acc_ref[...] + benc_ref[...]               # (tm, D) + (1, D)
        logits = jnp.dot(feats, wcls_ref[...],
                         preferred_element_type=jnp.float32)
        out_ref[...] = logits + bcls_ref[...]              # (tm, Np) + (1, Np)


def clip_finetuner_forward(x_nchw, w_enc, b_enc, w_cls, b_cls,
                           *, tm=128, tk_target=2048):
    """x_nchw: (B, C, H, W) float32. Returns (B, num_classes) float32.

    w_enc: (d_in, output_dim) frozen encoder projection (stand-in).
    w_cls: (num_classes, output_dim), b_cls: (num_classes,)  -- nn.Linear.
    """
    B, C, H, W = x_nchw.shape
    d_in = C * H * W
    output_dim = w_enc.shape[1]
    num_classes = w_cls.shape[0]

    # ---- tile sizing ----
    # M (batch) tile: multiple of 16 sublanes; don't over-pad tiny batches.
    tm = min(tm, max(16, _round_up(B, 16)))
    B_pad = _round_up(B, tm)
    # K tile: multiple of 128; pad d_in so tk divides it exactly.
    tk = min(_round_up(tk_target, 128), _round_up(d_in, 128))
    d_in_pad = _round_up(d_in, tk)
    # Lane-dense classifier output: pad num_classes up to a multiple of 128.
    nc_pad = _round_up(num_classes, 128)

    # ---- wrapper-side layout glue (zero padding only; no dtype round trip) ----
    x_flat = x_nchw.reshape(B, d_in)                            # stays f32
    x_flat = jnp.pad(x_flat, ((0, B_pad - B), (0, d_in_pad - d_in)))
    w_enc_bf16 = jnp.pad(w_enc, ((0, d_in_pad - d_in), (0, 0))
                         ).astype(jnp.bfloat16)                 # (Kp, D)
    b_enc_2d = b_enc.reshape(1, output_dim).astype(jnp.float32)
    # PyTorch Linear weight is (num_classes, output_dim); transpose for x @ W^T
    # and pad N to lane width.
    w_cls_t = jnp.pad(w_cls.T.astype(jnp.float32),
                      ((0, 0), (0, nc_pad - num_classes)))      # (D, Np)
    b_cls_2d = jnp.pad(b_cls.reshape(1, num_classes).astype(jnp.float32),
                       ((0, 0), (0, nc_pad - num_classes)))     # (1, Np)

    grid = (B_pad // tm, d_in_pad // tk)

    out = pl.pallas_call(
        clip_finetune_kernel,
        out_shape=jax.ShapeDtypeStruct((B_pad, nc_pad), jnp.float32),
        grid_spec=pltpu.PrefetchScalarGridSpec(
            num_scalar_prefetch=0,
            grid=grid,
            in_specs=[
                pl.BlockSpec((tm, tk), lambda i, k: (i, k)),            # x
                pl.BlockSpec((tk, output_dim), lambda i, k: (k, 0)),    # w_enc
                pl.BlockSpec((1, output_dim), lambda i, k: (0, 0)),     # b_enc
                pl.BlockSpec((output_dim, nc_pad), lambda i, k: (0, 0)),  # w_cls^T
                pl.BlockSpec((1, nc_pad), lambda i, k: (0, 0)),         # b_cls
            ],
            out_specs=pl.BlockSpec((tm, nc_pad), lambda i, k: (i, 0)),
            scratch_shapes=[pltpu.VMEM((tm, output_dim), jnp.float32)],
        ),
        compiler_params=pltpu.CompilerParams(
            # M tiles split across TensorCores (v7x megacore); K is a reduction.
            dimension_semantics=("parallel", "arbitrary"),
            # Safe on all gens (<= v7x physical 64 MiB); lets v5e/v6e use tiles
            # beyond the scoped-VMEM default.
            vmem_limit_bytes=48 * 1024 * 1024,
        ),
    )(x_flat, w_enc_bf16, b_enc_2d, w_cls_t, b_cls_2d)

    return out[:B, :num_classes]


if __name__ == "__main__":
    # Small shapes consistent with the forward: NCHW image input,
    # output_dim = model.visual.output_dim, num_classes for the classifier.
    B, C, H, W = 2, 3, 16, 16
    output_dim = 32
    num_classes = 8
    d_in = C * H * W  # 768

    key = jax.random.PRNGKey(0)
    kx, kwe, kbe, kwc, kbc = jax.random.split(key, 5)

    x = jax.random.normal(kx, (B, C, H, W), dtype=jnp.float32)

    # Deterministic synthetic parameters (shapes implied by the module __init__).
    w_enc = jax.random.normal(kwe, (d_in, output_dim), jnp.float32) * 0.02
    b_enc = jax.random.normal(kbe, (output_dim,), jnp.float32) * 0.02
    # nn.Linear(output_dim, num_classes): weight (num_classes, output_dim), bias (num_classes,)
    w_cls = jax.random.normal(kwc, (num_classes, output_dim), jnp.float32) * 0.1
    b_cls = jax.random.normal(kbc, (num_classes,), jnp.float32) * 0.1

    # Small tk so the toy run exercises the K-tiled accumulator path (3 K steps).
    logits = clip_finetuner_forward(x, w_enc, b_enc, w_cls, b_cls, tk_target=256)
    logits = jax.block_until_ready(logits)

    # Sanity check against pure-JAX reference.
    feats_ref = (x.reshape(B, d_in).astype(jnp.bfloat16)
                 @ w_enc.astype(jnp.bfloat16)).astype(jnp.float32) + b_enc
    ref = feats_ref @ w_cls.T.astype(jnp.float32) + b_cls
    assert logits.shape == (B, num_classes)
    assert jnp.allclose(logits, ref, atol=1e-2, rtol=1e-2)

    print("KERNEL_OK")
</pallas_src>

<mosaic_0001>
module attributes {stable_mosaic.version = 11 : i64} {
  func.func @clip_finetune_kernel(%arg0: i32, %arg1: i32, %arg2: memref<16x256xf32, #tpu.memory_space<vmem>>, %arg3: memref<256x32xbf16, #tpu.memory_space<vmem>>, %arg4: memref<1x32xf32, #tpu.memory_space<vmem>>, %arg5: memref<32x128xf32, #tpu.memory_space<vmem>>, %arg6: memref<1x128xf32, #tpu.memory_space<vmem>>, %arg7: memref<16x128xf32, #tpu.memory_space<vmem>>, %arg8: memref<16x32xf32, #tpu.memory_space<vmem>>) attributes {dimension_semantics = [#tpu.dimension_semantics<parallel>, #tpu.dimension_semantics<arbitrary>], iteration_bounds = array<i64: 1, 3>, scalar_prefetch = 0 : i64, scratch_operands = 1 : i64, tpu.core_type = #tpu.core_type<tc>, window_params = [{transform_indices = @transform_0, window_bounds = array<i64: 16, 256>}, {transform_indices = @transform_1, window_bounds = array<i64: 256, 32>}, {pipeline_mode = #tpu.pipeline_mode<synchronous>, transform_indices = @transform_2, window_bounds = array<i64: 1, 32>}, {pipeline_mode = #tpu.pipeline_mode<synchronous>, transform_indices = @transform_3, window_bounds = array<i64: 32, 128>}, {pipeline_mode = #tpu.pipeline_mode<synchronous>, transform_indices = @transform_4, window_bounds = array<i64: 1, 128>}, {transform_indices = @transform_5, window_bounds = array<i64: 16, 128>}]} {
    %c0_i32 = arith.constant 0 : i32
    %0 = arith.cmpi eq, %arg1, %c0_i32 : i32
    %1 = arith.extui %0 : i1 to i32
    %c0_i32_0 = arith.constant 0 : i32
    %2 = arith.cmpi ne, %1, %c0_i32_0 : i32
    scf.if %2 {
      %cst_9 = arith.constant 0.000000e+00 : f32
      %13 = vector.broadcast %cst_9 : f32 to vector<16x32xf32>
      %c0_10 = arith.constant 0 : index
      %c0_11 = arith.constant 0 : index
      %14 = vector.load %arg8[%c0_10, %c0_11] : memref<16x32xf32, #tpu.memory_space<vmem>>, vector<16x32xf32>
      tpu.vector_store %arg8[%c0_10, %c0_11], %13 {strides = array<i32>} : memref<16x32xf32, #tpu.memory_space<vmem>>, vector<16x32xf32>,
    } else {
    }
    %c0 = arith.constant 0 : index
    %c0_1 = arith.constant 0 : index
    %3 = vector.load %arg2[%c0, %c0_1] : memref<16x256xf32, #tpu.memory_space<vmem>>, vector<16x256xf32>
    %4 = arith.truncf %3 : vector<16x256xf32> to vector<16x256xbf16>
    %c0_2 = arith.constant 0 : index
    %c0_3 = arith.constant 0 : index
    %5 = vector.load %arg8[%c0_2, %c0_3] : memref<16x32xf32, #tpu.memory_space<vmem>>, vector<16x32xf32>
    %c0_4 = arith.constant 0 : index
    %c0_5 = arith.constant 0 : index
    %6 = vector.load %arg3[%c0_4, %c0_5] : memref<256x32xbf16, #tpu.memory_space<vmem>>, vector<256x32xbf16>
    %cst = arith.constant dense<0.000000e+00> : vector<16x32xf32>
    %7 = tpu.matmul %4, %6, %cst {dimension_numbers = #tpu.dot_dimension_numbers<[1], [0], [0], [1], [0, 0, 1, 1], [], []>} : vector<16x256xbf16>, vector<256x32xbf16>, vector<16x32xf32> -> vector<16x32xf32>
    %8 = arith.addf %5, %7 : vector<16x32xf32>
    %c0_6 = arith.constant 0 : index
    %c0_7 = arith.constant 0 : index
    %9 = vector.load %arg8[%c0_6, %c0_7] : memref<16x32xf32, #tpu.memory_space<vmem>>, vector<16x32xf32>
    tpu.vector_store %arg8[%c0_6, %c0_7], %8 {strides = array<i32>} : memref<16x32xf32, #tpu.memory_space<vmem>>, vector<16x32xf32>,
    %c2_i32 = arith.constant 2 : i32
    %10 = arith.cmpi eq, %arg1, %c2_i32 : i32
    %11 = arith.extui %10 : i1 to i32
    %c0_i32_8 = arith.constant 0 : i32
    %12 = arith.cmpi ne, %11, %c0_i32_8 : i32
    scf.if %12 {
      %c0_9 = arith.constant 0 : index
      %c0_10 = arith.constant 0 : index
      %13 = vector.load %arg8[%c0_9, %c0_10] : memref<16x32xf32, #tpu.memory_space<vmem>>, vector<16x32xf32>
      %c0_11 = arith.constant 0 : index
      %c0_12 = arith.constant 0 : index
      %14 = vector.load %arg4[%c0_11, %c0_12] : memref<1x32xf32, #tpu.memory_space<vmem>>, vector<1x32xf32>
      %15 = vector.broadcast %14 : vector<1x32xf32> to vector<16x32xf32>
      %16 = arith.addf %13, %15 : vector<16x32xf32>
      %c0_13 = arith.constant 0 : index
      %c0_14 = arith.constant 0 : index
      %17 = vector.load %arg5[%c0_13, %c0_14] : memref<32x128xf32, #tpu.memory_space<vmem>>, vector<32x128xf32>
      %cst_15 = arith.constant dense<0.000000e+00> : vector<16x128xf32>
      %18 = tpu.matmul %16, %17, %cst_15 {dimension_numbers = #tpu.dot_dimension_numbers<[1], [0], [0], [1], [0, 0, 1, 1], [], []>} : vector<16x32xf32>, vector<32x128xf32>, vector<16x128xf32> -> vector<16x128xf32>
      %c0_16 = arith.constant 0 : index
      %c0_17 = arith.constant 0 : index
      %19 = vector.load %arg6[%c0_16, %c0_17] : memref<1x128xf32, #tpu.memory_space<vmem>>, vector<1x128xf32>
      %20 = vector.broadcast %19 : vector<1x128xf32> to vector<16x128xf32>
      %21 = arith.addf %18, %20 : vector<16x128xf32>
      %c0_18 = arith.constant 0 : index
      %c0_19 = arith.constant 0 : index
      %22 = vector.load %arg7[%c0_18, %c0_19] : memref<16x128xf32, #tpu.memory_space<vmem>>, vector<16x128xf32>
      tpu.vector_store %arg7[%c0_18, %c0_19], %21 {strides = array<i32>} : memref<16x128xf32, #tpu.memory_space<vmem>>, vector<16x128xf32>,
    } else {
    }
    return
  }
  func.func @transform_0(%arg0: i32, %arg1: i32) -> (i32, i32) {
    %c0_i32 = arith.constant 0 : i32
    return %arg0, %arg1 : i32, i32
  }
  func.func @transform_1(%arg0: i32, %arg1: i32) -> (i32, i32) {
    %c0_i32 = arith.constant 0 : i32
    %c0_i32_0 = arith.constant 0 : i32
    return %arg1, %c0_i32 : i32, i32
  }
  func.func @transform_2(%arg0: i32, %arg1: i32) -> (i32, i32) {
    %c0_i32 = arith.constant 0 : i32
    %c0_i32_0 = arith.constant 0 : i32
    %c0_i32_1 = arith.constant 0 : i32
    return %c0_i32, %c0_i32_0 : i32, i32
  }
  func.func @transform_3(%arg0: i32, %arg1: i32) -> (i32, i32) {
    %c0_i32 = arith.constant 0 : i32
    %c0_i32_0 = arith.constant 0 : i32
    %c0_i32_1 = arith.constant 0 : i32
    return %c0_i32, %c0_i32_0 : i32, i32
  }
  func.func @transform_4(%arg0: i32, %arg1: i32) -> (i32, i32) {
    %c0_i32 = arith.constant 0 : i32
    %c0_i32_0 = arith.constant 0 : i32
    %c0_i32_1 = arith.constant 0 : i32
    return %c0_i32, %c0_i32_0 : i32, i32
  }
  func.func @transform_5(%arg0: i32, %arg1: i32) -> (i32, i32) {
    %c0_i32 = arith.constant 0 : i32
    %c0_i32_0 = arith.constant 0 : i32
    return %arg0, %c0_i32 : i32, i32
  }
}

</mosaic_0001>

<bundles_post_ra>
// kernel: tpu_custom_call.1
= control target key start
LH: loop header
LB: loop body
LE: loop exit
PB: predicated region body
PF: predicated region fallthrough
CT: control target
= control target key end

     0   :  { %10 = vsyncpa [#allocation5], 0  ;;  %s920_s18 = smov 0   ;;  %s922_s19 = smov 0   ;;  %s1062_s0 = inlined_call_operand.vmem [shape: f32[16,768], index: 0, kind: input, shape index: {}]   ;;  %s1063_s1 = inlined_call_operand.vmem [shape: bf16[768,32], index: 1, kind: input, shape index: {}]   ;;  %s1064_s2 = inlined_call_operand.vmem [shape: f32[1,32], index: 2, kind: input, shape index: {}]   ;;  %s1065_s3 = inlined_call_operand.vmem [shape: f32[32,128], index: 3, kind: input, shape index: {}]   ;;  %s1066_s4 = inlined_call_operand.vmem [shape: f32[1,128], index: 4, kind: input, shape index: {}]   ;;  %s1067_s5 = inlined_call_operand.hbm [shape: f32[16,128], index: 5, kind: output, shape index: {}]  }
   0x1   :  { %s924_s20 = smov 0   ;;  %s926_s21 = smov 0  }
   0x2   :  { %s928_s22 = smov 0  }
   0x3 LB: > { %s666_s23 = sadd.s32 4294967295, %s884_s22   ;;  %s25_s24 = sadd.s32 1, %s880_s21  ;;  %s884_s22 = sphi %s928_s22, %s16_s22   ;;  %s880_s21 = sphi %s926_s21, %s1072_s21   ;;  %s876_s20 = sphi %s924_s20, %s1071_s20   ;;  %s872_s19 = sphi %s922_s19, %s1070_s19   ;;  %s868_s18 = sphi %s920_s18, %s1069_s18  }
   0x4   : > { %p26_p0 = scmp.ge.s32.totalorder %s25_s24, 3  ;;  %p44_p1 = scmp.ne.s32.totalorder %s872_s19, %s868_s18 }
   0x5   : > { %p45_p2 = scmp.eq.s32.totalorder %s884_s22, 0  ;;  %s37_s26 = sadd.s32 1, %s872_s19 }
   0x6   : > { %s1074_s24 = smov (%p26_p0, %s25_s24), 0  ;;  %p668_p5 = scmp.ge.s32.totalorder %s884_s22, 3 }
   0x7   : > { %p46_p3 = por %p45_p2, %p44_p1  ;;  %s33_s25 = ssub.s32 %s880_s21, %s1074_s24 }
   0x8   : > { %p35_p4 = scmp.eq.s32.totalorder %s33_s25, 0  ;;  %194 = sbr.rel (%p668_p5) target bundleno = 22 (0x16), region = 28 }
   0xa   : > { %s956_s27 = scalar_select %p35_p4, %s872_s19, %s37_s26  }
   0xf   : > { %197 = sbr.rel (!%p46_p3) target bundleno = 22 (0x16), region = 32  ;;  %s199_s28 = sand.u32 (%p46_p3), 1, %s872_s19  }
  0x10   : > { %s702_s29 = sshll.u32 (%p46_p3), %s880_s21, 4  ;;  %s669_s30 = sshll.u32 (%p46_p3), %s199_s28, 5 }
  0x11   : > { %s207_s8 = scalar_lea.vmem (%p46_p3), %s1062_s0, %s702_s29  ;;  %s201_s9 = scalar_lea.vmem (%p46_p3), [#allocation3], %s669_s30 }
  0x12   : > { %v220_v0 = vld [vmem:[%s207_s8] sm:$0xff] (%p46_p3)  ;;  %v222_v1 = vld [vmem:[%s207_s8 + $0x8] sm:$0xff] (%p46_p3)  ;;  %v224_v2 = vld [vmem:[%s207_s8 + $0x30] sm:$0xff] (%p46_p3) }
  0x13   : > { %221 = vst [vmem:[%s201_s9] sm:$0xff] (%p46_p3), %v220_v0  ;;  %223 = vst [vmem:[%s201_s9 + $0x8] sm:$0xff] (%p46_p3), %v222_v1  ;;  %v226_v3 = vld [vmem:[%s207_s8 + $0x38] sm:$0xff] (%p46_p3) }
  0x14   : > { %225 = vst [vmem:[%s201_s9 + $0x10] sm:$0xff] (%p46_p3), %v224_v2  ;;  %227 = vst [vmem:[%s201_s9 + $0x18] sm:$0xff] (%p46_p3), %v226_v3 }
  0x16 PF: > { %p672_p6 = scmp.ge.s32.totalorder %s884_s22, 1  ;;  %p241_p7 = scmp.lt.s32.totalorder %s884_s22, 4 }
  0x18   : > { %p242_p8 = pnand %p672_p6, %p241_p7 }
  0x19   : > { %s248_s10 = sand.u32 (!%p242_p8), 1, %s868_s18   ;;  %s674_s11 = sshll.u32 (!%p242_p8), %s876_s20, 5 }
  0x1a   : > { %245 = sbr.rel (%p242_p8) target bundleno = 544 (0x220), region = 59  ;;  %s673_s12 = sshll.u32 (!%p242_p8), %s248_s10, 5 }
  0x1b   : > { %p278_p9 = scmp.lt.s32.totalorder (!%p242_p8), %s674_s11, 95  ;;  %s973_s17 = scalar_lea.vmem (!%p242_p8), [#allocation3], %s673_s12 }
  0x1c   : > { %p676_p10 = scmp.ne.s32.totalorder (!%p242_p8), %s876_s20, 0 }
  0x21   : > { %s1076_s11 = smov (!%p278_p9, %s674_s11), 95  ;;  %288 = sbr.rel (%p676_p10) target bundleno = 40 (0x28), region = 67 }
  0x22   : > { %s675_s13 = sshll.u32 %s1076_s11, 2  ;;  %vm289_vm0 = vcmask (!%p676_p10), 261120   ;;  %v886_v4 = vmov (!%p676_p10), 0.0  }
  0x23   : > { %s971_s16 = scalar_lea.vmem %s1063_s1, %s675_s13  ;;  %290 = vst.msk [vmem:[#allocation2] sm:$0xff] (!%p676_p10), %vm289_vm0, %v886_v4  ;;  %291 = vst.msk [vmem:[#allocation2 + $0x8] sm:$0xff] (!%p676_p10), %vm289_vm0, %v886_v4 }
  0x28 PF: > { %v800_v5 = vld [vmem:[%s971_s16 + $0x40] sm:$0xff]   ;;  %v802_v7 = vld [vmem:[%s971_s16 + $0x48] sm:$0xff]   ;;  %v804_v9 = vld [vmem:[%s971_s16 + $0x50] sm:$0xff]   ;;  %vm471_vm1 = vcmask 261120   ;;  %p693_p11 = scmp.ne.s32.totalorder %s876_s20, 2 }
  0x29   : > { %v801_v6 = vld [vmem:[%s971_s16] sm:$0xff]   ;;  %703 = vmatprep.subr.bf16.mxu0 %v800_v5  ;;  %v803_v8 = vld [vmem:[%s971_s16 + $0x8] sm:$0xff]   ;;  %v805_v10 = vld [vmem:[%s971_s16 + $0x10] sm:$0xff]  }
  0x2a   : > { %704 = vmatpush3.bf16.msra.mxu0 %v801_v6  ;;  %v806_v11 = vld [vmem:[%s971_s16 + $0x58] sm:$0xff]   ;;  %v808_v13 = vld [vmem:[%s971_s16 + $0x60] sm:$0xff]   ;;  %v810_v15 = vld [vmem:[%s971_s16 + $0x68] sm:$0xff]  }
  0x2b   : > { %705 = vmatprep.subr.bf16.mxu0 %v802_v7  ;;  %v807_v12 = vld [vmem:[%s971_s16 + $0x18] sm:$0xff]   ;;  %v809_v14 = vld [vmem:[%s971_s16 + $0x20] sm:$0xff]   ;;  %v295_v17 = vld [vmem:[%s973_s17 + $0x18] sm:$0xff] }
  0x2c   : > { %v293_v16 = vld [vmem:[%s973_s17 + $0x8] sm:$0xff]  ;;  %v811_v19 = vld [vmem:[%s971_s16 + $0x28] sm:$0xff]   ;;  %v812_v20 = vld [vmem:[%s971_s16 + $0x70] sm:$0xff]  }
  0x2d   : > { %v297_v18 = vpack.c.bf16 %v295_v17, %v293_v16  ;;  %v813_v21 = vld [vmem:[%s971_s16 + $0x30] sm:$0xff]   ;;  %v814_v22 = vld [vmem:[%s971_s16 + $0x78] sm:$0xff]   ;;  %v294_v25 = vld [vmem:[%s973_s17 + $0x10] sm:$0xff] }
  0x2e   : > { %706 = vmatpush3.bf16.msra.mxu0 %v803_v8  ;;  %v815_v23 = vld [vmem:[%s971_s16 + $0x38] sm:$0xff]   ;;  %v292_v24 = vld [vmem:[%s973_s17] sm:$0xff]  ;;  %v298_v28 = vld [vmem:[#allocation2] sm:$0xff] }
  0x2f   : > { %707 = vmatprep.subr.bf16.mxu0 %v804_v9  ;;  %460 = vmatprep.mubr.bf16.mxu0 %v297_v18  ;;  %v296_v26 = vpack.c.bf16 %v294_v25, %v292_v24  ;;  %v299_v32 = vld [vmem:[#allocation2 + $0x8] sm:$0xff]  ;;  %v489_v37 = vld [vmem:[%s1065_s3] sm:$0xff] (!%p693_p11)  ;;  %v491_v39 = vld [vmem:[%s1065_s3 + $0x10] sm:$0xff] (!%p693_p11) }
  0x30   : > { %v490_v38 = vld [vmem:[%s1065_s3 + $0x8] sm:$0xff] (!%p693_p11)  ;;  %v492_v41 = vld [vmem:[%s1065_s3 + $0x18] sm:$0xff] (!%p693_p11)  ;;  %v694_v44 = vld [vmem:[%s1064_s2] ss:$0 sm:$0xff] (!%p693_p11) }
  0x31   : > { %v742_v40 = vpack.c.bf16 (!%p693_p11), %v490_v38, %v489_v37  ;;  %v746_v43 = vpack.c.bf16 (!%p693_p11), %v492_v41, %v491_v39  ;;  %v695_v48 = vld [vmem:[%s1066_s4] ss:$0 sm:$0xff] (!%p693_p11) }
  0x32   : > { %708 = vmatpush3.bf16.msra.mxu0 %v805_v10 }
  0x33   : > { %709 = vmatprep.subr.bf16.mxu0 %v806_v11 }
  0x36   : > { %710 = vmatpush3.bf16.msra.mxu0 %v807_v12 }
  0x37   : > { %711 = vmatprep.subr.bf16.mxu0 %v808_v13 }
  0x3a   : > { %712 = vmatpush3.bf16.msra.mxu0 %v809_v14 }
  0x3b   : > { %713 = vmatprep.subr.bf16.mxu0 %v810_v15 }
  0x3e   : > { %714 = vmatpush3.bf16.msra.mxu0 %v811_v19 }
  0x3f   : > { %715 = vmatprep.subr.bf16.mxu0 %v812_v20 }
  0x42   : > { %716 = vmatpush3.bf16.msra.mxu0 %v813_v21 }
  0x43   : > { %717 = vmatprep.subr.bf16.mxu0 %v814_v22 }
  0x46   : > { %718 = vmatpush3.bf16.msra.mxu0 %v815_v23 }
  0x47   : > { %743 = vmatprep.subr.bf16.mxu0 (!%p693_p11), %v742_v40 }
  0x49   : > { %461 = vmatmul.mubr.bf16.vlgmr.msra.gmra.mrb[0].mxu0 %v296_v26 }
  0x4a   : > { %745 = vmatpush3.bf16.msra.mxu0 (!%p693_p11), %v742_v40 }
  0x4b   : > { %747 = vmatprep.subr.bf16.mxu0 (!%p693_p11), %v746_v43 }
  0x4e   : > { %749 = vmatpush3.bf16.msra.mxu0 (!%p693_p11), %v746_v43 }
 0x11c   : > { %v719_v27 = vpop.f32.mrb[0].mxu0 }
 0x11d   : > { %v720_v29 = vpop.f32.mrb[1].mxu0 }
 0x11e   : > { %v721_v30 = vadd.f32 %v720_v29, %v719_v27  ;;  %v722_v31 = vpop.f32.mrb[2].mxu0  ;;  %477 = sbr.rel (%p693_p11) target bundleno = 518 (0x206), region = 71 }
 0x11f   : > { %v723_v33 = vpop.f32.mrb[3].mxu0 }
 0x120   : > { %v469_v34 = vadd.f32 %v721_v30, %v298_v28  ;;  %v724_v35 = vadd.f32 %v723_v33, %v722_v31 }
 0x122   : > { %472 = vst.msk [vmem:[#allocation2] sm:$0xff] %vm471_vm1, %v469_v34  ;;  %v470_v36 = vadd.f32 %v724_v35, %v299_v32 }
 0x124   : > { %473 = vst.msk [vmem:[#allocation2 + $0x8] sm:$0xff] %vm471_vm1, %v470_v36 }
 0x129   : > { %v478_v42 = vld [vmem:[#allocation2] sm:$0xff] }
 0x12a   : > { %v487_v45 = vadd.f32 %v694_v44, %v478_v42 }
 0x12b   : > { %v479_v46 = vld [vmem:[#allocation2 + $0x8] sm:$0xff] }
 0x12c   : > { %739 = vmatprep.mubr.msk.f32.mxu0 %vm471_vm1, %v487_v45  ;;  %v488_v47 = vadd.f32 %v694_v44, %v479_v46 }
 0x12e   : > { %740 = vmatmul.mubr.msk.f32.vlgmr.msra.gmra.mrb[0].mxu0 %vm471_vm1, %v488_v47 }
 0x201   : > { %v741_v49 = vpop.f32.mrb[0].mxu0 }
 0x202   : > { %v578_v50 = vadd.f32 %v741_v49, %v695_v48  ;;  %v572_v51 = vpop.f32.mrb[1].mxu0 }
 0x203   : > { %v573_v52 = vadd.f32 %v695_v48, %v572_v51 }
 0x204   : > { %582 = vst [vmem:[#allocation4 + $0x8] sm:$0xff] %v578_v50 }
 0x205   : > { %581 = vst [vmem:[#allocation4] sm:$0xff] %v573_v52 }
 0x206 PF: > { %p1021_p12 = scmp.eq.s32.totalorder %s666_s23, 2  ;;  %s887_s12 = smov [#allocation4]  }
 0x207   : > { %s592_s13 = sshll.u32 %s887_s12, 4  ;;  %s593_s13 = int_to_ptr.vmem [resolvable:$true] %s592_s13 }
 0x208   : > { %s816_s14 = scalar_lea.vmem %s593_s13, 256  ;;  %p823_p2 = scmp.lt.s32.totalorder %s593_s13, %s593_s13 }
 0x209   : > { %p817_p13 = scmp.ne.s32.totalorder %s593_s13, %s816_s14  ;;  %p824_p3 = scmp.lt.s32.totalorder %s816_s14, %s816_s14 }
 0x20b   : > { %p818_p0 = pnand %p817_p13, %p1021_p12  ;;  %p825_p4 = por %p824_p3, %p823_p2 }
 0x20d   : > { %p819_p1 = pneg %p818_p0 }
 0x20f   : > { %p826_p5 = pnand %p825_p4, %p819_p1 }
 0x211   : > { %829 = shalt.err (!%p826_p5)
}
 0x212   : > { %s830_s23 = scalar_lea.hbm %s1067_s5, 256 }
 0x213   : > { %p831_p6 = scmp.ne.s32.totalorder %s1067_s5, %s830_s23  ;;  %p836_p9 = scmp.lt.u32.totalorder %s830_s23, %s1067_s5 }
 0x215   : > { %p832_p7 = pnand %p831_p6, %p1021_p12 }
 0x217   : > { %p833_p8 = pneg %p832_p7 }
 0x219   : > { %p838_p10 = pnand %p836_p9, %p833_p8 }
 0x21b   : > { %841 = shalt.err (!%p838_p10)
}
 0x21c   : > { %s888_s28 = smov 128   ;;  %s889_s29 = smov 8  }
 0x21d   : > { %751 = dma.vmem_to_hbm [thread:$0]  (%p1021_p12), %s593_s13, 256, %s1067_s5, [#allocation5], %s888_s28, %s888_s28, %s889_s29  }
 0x21e   : > { %863 = dma.done.wait (%p1021_p12), [#allocation5], 256  }
 0x21f   : > { %865 = vsyncadd (%p1021_p12), [#allocation5], 4294967040 }
 0x220 PF: > { %s16_s22 = sadd.s32 1, %s884_s22   ;;  %s1069_s18 = smov %s872_s19 }
 0x221   : > { %p13_p11 = scmp.ge.s32.totalorder %s16_s22, 5   ;;  %s1070_s19 = smov %s956_s27 }
 0x222   : > { %s1071_s20 = smov %s880_s21  ;;  %s1072_s21 = smov %s1074_s24 }
 0x223   :  { %15 = sbr.rel (!%p13_p11) target bundleno = 3 (0x3), region = 107 }
 0x22a   :  { %608 = vsyncpa [#allocation5], 1 }
 0x22b   :  { %610 = vsyncpa [#allocation5 + $0x1], 1 }

</bundles_post_ra>
